<compile_context>
chip_gen: v5e
topology: v5e:2x2
jax: 0.10.0
libtpu: 0.0.40
codegen_flags: <defaults>
</compile_context>

<pallas_src>
import functools

import jax
import jax.numpy as jnp
from jax.experimental import pallas as pl
from jax.experimental.pallas import tpu as pltpu


def _mlp_kernel(p_ref, x_ref, o_ref):
    # p_ref: (26,) f32 in SMEM (packed weights/biases, see pack_params)
    # x_ref: (3, TB) f32 block — features on sublanes, batch on lanes
    # o_ref: (1, TB) f32 block — lane-dense output row
    x0 = x_ref[pl.ds(0, 1), :]
    x1 = x_ref[pl.ds(1, 1), :]
    x2 = x_ref[pl.ds(2, 1), :]

    # fc0: Linear(3 -> 1) + sigmoid
    z0 = p_ref[0] * x0 + p_ref[1] * x1 + p_ref[2] * x2 + p_ref[3]
    h0 = jax.nn.sigmoid(z0)                                     # (1, TB)

    # fc1: Linear(1 -> 3) + relu
    h1 = [jnp.maximum(p_ref[4 + j] * h0 + p_ref[7 + j], 0.0) for j in range(3)]

    # fc2: Linear(3 -> 3) + relu
    h2 = []
    for j in range(3):
        z = p_ref[19 + j] + p_ref[10 + 3 * j + 0] * h1[0]
        z = z + p_ref[10 + 3 * j + 1] * h1[1]
        z = z + p_ref[10 + 3 * j + 2] * h1[2]
        h2.append(jnp.maximum(z, 0.0))

    # fc3: Linear(3 -> 1), no activation
    out = p_ref[25] + p_ref[22] * h2[0]
    out = out + p_ref[23] * h2[1]
    out = out + p_ref[24] * h2[2]
    o_ref[...] = out


def _round_up(n, m):
    return ((n + m - 1) // m) * m


def _choose_tiling(B, tb_max):
    """Pick a lane-tile TB (multiple of 128) and padded batch B_pad = grid*TB."""
    b128 = _round_up(max(B, 1), 128)
    if b128 <= tb_max:
        return b128, b128
    n_tiles = -(-b128 // tb_max)
    tb = _round_up(-(-b128 // n_tiles), 128)
    return tb, tb * n_tiles


def pack_params(params):
    """Flatten the 26 weights/biases once (hoisted out of the per-call path).

    Weights are in PyTorch layout (out_features, in_features); row-major
    flatten gives flat[...] indices used inside _mlp_kernel.
    """
    (w0, b0), (w1, b1), (w2, b2), (w3, b3) = params
    return jnp.concatenate([
        w0.reshape(-1), b0.reshape(-1),   # [0:3],   [3]
        w1.reshape(-1), b1.reshape(-1),   # [4:7],   [7:10]
        w2.reshape(-1), b2.reshape(-1),   # [10:19], [19:22]
        w3.reshape(-1), b3.reshape(-1),   # [22:25], [25]
    ]).astype(jnp.float32)


@functools.partial(jax.jit, static_argnames=("tb_max",))
def my_model_forward(x, packed_params, *, tb_max=8192):
    """x: (B, 3) float32 -> (B, 1) float32. Semantics match myModel.forward."""
    B = x.shape[0]
    TB, B_pad = _choose_tiling(B, tb_max)

    xt = jnp.transpose(x.astype(jnp.float32))          # (3, B) batch-on-lanes
    if B_pad != B:
        xt = jnp.pad(xt, ((0, 0), (0, B_pad - B)))     # pad lanes discarded below

    out_t = pl.pallas_call(
        _mlp_kernel,
        out_shape=jax.ShapeDtypeStruct((1, B_pad), jnp.float32),
        grid=(B_pad // TB,),
        in_specs=[
            pl.BlockSpec(memory_space=pltpu.MemorySpace.SMEM),  # 26 packed scalars
            pl.BlockSpec((3, TB), lambda i: (0, i)),            # x tile
        ],
        out_specs=pl.BlockSpec((1, TB), lambda i: (0, i)),
        compiler_params=pltpu.CompilerParams(
            dimension_semantics=("parallel",)),                 # v7x megacore
    )(packed_params, xt)

    return out_t[0, :B].reshape(B, 1)


def init_params(key):
    """Deterministic init mimicking torch.nn.Linear default (U[-1/sqrt(in), 1/sqrt(in)]).
    Weights kept in PyTorch layout (out_features, in_features)."""
    dims = [(3, 1), (1, 3), (3, 3), (3, 1)]  # (in, out) for fc0..fc3
    params = []
    for (din, dout) in dims:
        key, kw, kb = jax.random.split(key, 3)
        bound = 1.0 / jnp.sqrt(jnp.float32(din))
        w = jax.random.uniform(kw, (dout, din), jnp.float32, -bound, bound)
        b = jax.random.uniform(kb, (dout,), jnp.float32, -bound, bound)
        params.append((w, b))
    return params


def _reference(x, params):
    (w0, b0), (w1, b1), (w2, b2), (w3, b3) = params
    h = jax.nn.sigmoid(x @ w0.T + b0)
    h = jnp.maximum(h @ w1.T + b1, 0.0)
    h = jnp.maximum(h @ w2.T + b2, 0.0)
    return h @ w3.T + b3


if __name__ == "__main__":
    key = jax.random.PRNGKey(0)
    kx, kp, kx2 = jax.random.split(key, 3)
    params = init_params(kp)
    packed = pack_params(params)   # packed once, reused across calls

    # Small batch, single tile.
    B = 8
    x = jax.random.normal(kx, (B, 3), jnp.float32)
    out = my_model_forward(x, packed)
    jax.block_until_ready(out)
    ref = _reference(x, params)
    assert out.shape == (B, 1)
    assert jnp.allclose(out, ref, atol=1e-5, rtol=1e-5), "mismatch vs reference (B=8)"

    # Multi-tile batch grid (exercise the pipelined path with a small tile).
    B2 = 1000
    x2 = jax.random.normal(kx2, (B2, 3), jnp.float32)
    out2 = my_model_forward(x2, packed, tb_max=256)
    jax.block_until_ready(out2)
    ref2 = _reference(x2, params)
    assert out2.shape == (B2, 1)
    assert jnp.allclose(out2, ref2, atol=1e-5, rtol=1e-5), "mismatch vs reference (B=1000)"

    print("KERNEL_OK")
</pallas_src>

<mosaic_0001>
module attributes {stable_mosaic.version = 11 : i64} {
  func.func @_mlp_kernel(%arg0: i32, %arg1: memref<26xf32, #tpu.memory_space<smem>>, %arg2: memref<3x128xf32, #tpu.memory_space<vmem>>, %arg3: memref<1x128xf32, #tpu.memory_space<vmem>>) attributes {dimension_semantics = [#tpu.dimension_semantics<parallel>], iteration_bounds = array<i64: 1>, scalar_prefetch = 0 : i64, scratch_operands = 0 : i64, tpu.core_type = #tpu.core_type<tc>, window_params = [{transform_indices = @transform_0, window_bounds = array<i64: 26>}, {transform_indices = @transform_1, window_bounds = array<i64: 3, 128>}, {transform_indices = @transform_2, window_bounds = array<i64: 1, 128>}]} {
    %c0 = arith.constant 0 : index
    %c0_0 = arith.constant 0 : index
    %0 = vector.load %arg2[%c0, %c0_0] : memref<3x128xf32, #tpu.memory_space<vmem>>, vector<1x128xf32>
    %c1 = arith.constant 1 : index
    %c0_1 = arith.constant 0 : index
    %1 = vector.load %arg2[%c1, %c0_1] : memref<3x128xf32, #tpu.memory_space<vmem>>, vector<1x128xf32>
    %c2 = arith.constant 2 : index
    %c0_2 = arith.constant 0 : index
    %2 = vector.load %arg2[%c2, %c0_2] : memref<3x128xf32, #tpu.memory_space<vmem>>, vector<1x128xf32>
    %c0_3 = arith.constant 0 : index
    %3 = memref.load %arg1[%c0_3] : memref<26xf32, #tpu.memory_space<smem>>
    %4 = vector.broadcast %3 : f32 to vector<1x128xf32>
    %5 = arith.mulf %4, %0 : vector<1x128xf32>
    %c1_4 = arith.constant 1 : index
    %6 = memref.load %arg1[%c1_4] : memref<26xf32, #tpu.memory_space<smem>>
    %7 = vector.broadcast %6 : f32 to vector<1x128xf32>
    %8 = arith.mulf %7, %1 : vector<1x128xf32>
    %9 = arith.addf %5, %8 : vector<1x128xf32>
    %c2_5 = arith.constant 2 : index
    %10 = memref.load %arg1[%c2_5] : memref<26xf32, #tpu.memory_space<smem>>
    %11 = vector.broadcast %10 : f32 to vector<1x128xf32>
    %12 = arith.mulf %11, %2 : vector<1x128xf32>
    %13 = arith.addf %9, %12 : vector<1x128xf32>
    %c3 = arith.constant 3 : index
    %14 = memref.load %arg1[%c3] : memref<26xf32, #tpu.memory_space<smem>>
    %15 = vector.broadcast %14 : f32 to vector<1x128xf32>
    %16 = arith.addf %13, %15 : vector<1x128xf32>
    %17 = arith.negf %16 : vector<1x128xf32>
    %18 = math.exp %17 : vector<1x128xf32>
    %cst = arith.constant 1.000000e+00 : f32
    %19 = vector.broadcast %cst : f32 to vector<1x128xf32>
    %20 = arith.addf %19, %18 : vector<1x128xf32>
    %21 = arith.divf %19, %20 : vector<1x128xf32>
    %c4 = arith.constant 4 : index
    %22 = memref.load %arg1[%c4] : memref<26xf32, #tpu.memory_space<smem>>
    %23 = vector.broadcast %22 : f32 to vector<1x128xf32>
    %24 = arith.mulf %23, %21 : vector<1x128xf32>
    %c7 = arith.constant 7 : index
    %25 = memref.load %arg1[%c7] : memref<26xf32, #tpu.memory_space<smem>>
    %26 = vector.broadcast %25 : f32 to vector<1x128xf32>
    %27 = arith.addf %24, %26 : vector<1x128xf32>
    %cst_6 = arith.constant 0.000000e+00 : f32
    %28 = vector.broadcast %cst_6 : f32 to vector<1x128xf32>
    %29 = arith.maximumf %27, %28 : vector<1x128xf32>
    %c5 = arith.constant 5 : index
    %30 = memref.load %arg1[%c5] : memref<26xf32, #tpu.memory_space<smem>>
    %31 = vector.broadcast %30 : f32 to vector<1x128xf32>
    %32 = arith.mulf %31, %21 : vector<1x128xf32>
    %c8 = arith.constant 8 : index
    %33 = memref.load %arg1[%c8] : memref<26xf32, #tpu.memory_space<smem>>
    %34 = vector.broadcast %33 : f32 to vector<1x128xf32>
    %35 = arith.addf %32, %34 : vector<1x128xf32>
    %cst_7 = arith.constant 0.000000e+00 : f32
    %36 = vector.broadcast %cst_7 : f32 to vector<1x128xf32>
    %37 = arith.maximumf %35, %36 : vector<1x128xf32>
    %c6 = arith.constant 6 : index
    %38 = memref.load %arg1[%c6] : memref<26xf32, #tpu.memory_space<smem>>
    %39 = vector.broadcast %38 : f32 to vector<1x128xf32>
    %40 = arith.mulf %39, %21 : vector<1x128xf32>
    %c9 = arith.constant 9 : index
    %41 = memref.load %arg1[%c9] : memref<26xf32, #tpu.memory_space<smem>>
    %42 = vector.broadcast %41 : f32 to vector<1x128xf32>
    %43 = arith.addf %40, %42 : vector<1x128xf32>
    %cst_8 = arith.constant 0.000000e+00 : f32
    %44 = vector.broadcast %cst_8 : f32 to vector<1x128xf32>
    %45 = arith.maximumf %43, %44 : vector<1x128xf32>
    %c19 = arith.constant 19 : index
    %46 = memref.load %arg1[%c19] : memref<26xf32, #tpu.memory_space<smem>>
    %c10 = arith.constant 10 : index
    %47 = memref.load %arg1[%c10] : memref<26xf32, #tpu.memory_space<smem>>
    %48 = vector.broadcast %47 : f32 to vector<1x128xf32>
    %49 = arith.mulf %48, %29 : vector<1x128xf32>
    %50 = vector.broadcast %46 : f32 to vector<1x128xf32>
    %51 = arith.addf %50, %49 : vector<1x128xf32>
    %c11 = arith.constant 11 : index
    %52 = memref.load %arg1[%c11] : memref<26xf32, #tpu.memory_space<smem>>
    %53 = vector.broadcast %52 : f32 to vector<1x128xf32>
    %54 = arith.mulf %53, %37 : vector<1x128xf32>
    %55 = arith.addf %51, %54 : vector<1x128xf32>
    %c12 = arith.constant 12 : index
    %56 = memref.load %arg1[%c12] : memref<26xf32, #tpu.memory_space<smem>>
    %57 = vector.broadcast %56 : f32 to vector<1x128xf32>
    %58 = arith.mulf %57, %45 : vector<1x128xf32>
    %59 = arith.addf %55, %58 : vector<1x128xf32>
    %cst_9 = arith.constant 0.000000e+00 : f32
    %60 = vector.broadcast %cst_9 : f32 to vector<1x128xf32>
    %61 = arith.maximumf %59, %60 : vector<1x128xf32>
    %c20 = arith.constant 20 : index
    %62 = memref.load %arg1[%c20] : memref<26xf32, #tpu.memory_space<smem>>
    %c13 = arith.constant 13 : index
    %63 = memref.load %arg1[%c13] : memref<26xf32, #tpu.memory_space<smem>>
    %64 = vector.broadcast %63 : f32 to vector<1x128xf32>
    %65 = arith.mulf %64, %29 : vector<1x128xf32>
    %66 = vector.broadcast %62 : f32 to vector<1x128xf32>
    %67 = arith.addf %66, %65 : vector<1x128xf32>
    %c14 = arith.constant 14 : index
    %68 = memref.load %arg1[%c14] : memref<26xf32, #tpu.memory_space<smem>>
    %69 = vector.broadcast %68 : f32 to vector<1x128xf32>
    %70 = arith.mulf %69, %37 : vector<1x128xf32>
    %71 = arith.addf %67, %70 : vector<1x128xf32>
    %c15 = arith.constant 15 : index
    %72 = memref.load %arg1[%c15] : memref<26xf32, #tpu.memory_space<smem>>
    %73 = vector.broadcast %72 : f32 to vector<1x128xf32>
    %74 = arith.mulf %73, %45 : vector<1x128xf32>
    %75 = arith.addf %71, %74 : vector<1x128xf32>
    %cst_10 = arith.constant 0.000000e+00 : f32
    %76 = vector.broadcast %cst_10 : f32 to vector<1x128xf32>
    %77 = arith.maximumf %75, %76 : vector<1x128xf32>
    %c21 = arith.constant 21 : index
    %78 = memref.load %arg1[%c21] : memref<26xf32, #tpu.memory_space<smem>>
    %c16 = arith.constant 16 : index
    %79 = memref.load %arg1[%c16] : memref<26xf32, #tpu.memory_space<smem>>
    %80 = vector.broadcast %79 : f32 to vector<1x128xf32>
    %81 = arith.mulf %80, %29 : vector<1x128xf32>
    %82 = vector.broadcast %78 : f32 to vector<1x128xf32>
    %83 = arith.addf %82, %81 : vector<1x128xf32>
    %c17 = arith.constant 17 : index
    %84 = memref.load %arg1[%c17] : memref<26xf32, #tpu.memory_space<smem>>
    %85 = vector.broadcast %84 : f32 to vector<1x128xf32>
    %86 = arith.mulf %85, %37 : vector<1x128xf32>
    %87 = arith.addf %83, %86 : vector<1x128xf32>
    %c18 = arith.constant 18 : index
    %88 = memref.load %arg1[%c18] : memref<26xf32, #tpu.memory_space<smem>>
    %89 = vector.broadcast %88 : f32 to vector<1x128xf32>
    %90 = arith.mulf %89, %45 : vector<1x128xf32>
    %91 = arith.addf %87, %90 : vector<1x128xf32>
    %cst_11 = arith.constant 0.000000e+00 : f32
    %92 = vector.broadcast %cst_11 : f32 to vector<1x128xf32>
    %93 = arith.maximumf %91, %92 : vector<1x128xf32>
    %c25 = arith.constant 25 : index
    %94 = memref.load %arg1[%c25] : memref<26xf32, #tpu.memory_space<smem>>
    %c22 = arith.constant 22 : index
    %95 = memref.load %arg1[%c22] : memref<26xf32, #tpu.memory_space<smem>>
    %96 = vector.broadcast %95 : f32 to vector<1x128xf32>
    %97 = arith.mulf %96, %61 : vector<1x128xf32>
    %98 = vector.broadcast %94 : f32 to vector<1x128xf32>
    %99 = arith.addf %98, %97 : vector<1x128xf32>
    %c23 = arith.constant 23 : index
    %100 = memref.load %arg1[%c23] : memref<26xf32, #tpu.memory_space<smem>>
    %101 = vector.broadcast %100 : f32 to vector<1x128xf32>
    %102 = arith.mulf %101, %77 : vector<1x128xf32>
    %103 = arith.addf %99, %102 : vector<1x128xf32>
    %c24 = arith.constant 24 : index
    %104 = memref.load %arg1[%c24] : memref<26xf32, #tpu.memory_space<smem>>
    %105 = vector.broadcast %104 : f32 to vector<1x128xf32>
    %106 = arith.mulf %105, %93 : vector<1x128xf32>
    %107 = arith.addf %103, %106 : vector<1x128xf32>
    %c0_12 = arith.constant 0 : index
    %c0_13 = arith.constant 0 : index
    %108 = vector.load %arg3[%c0_12, %c0_13] : memref<1x128xf32, #tpu.memory_space<vmem>>, vector<1x128xf32>
    tpu.vector_store %arg3[%c0_12, %c0_13], %107 {strides = array<i32>} : memref<1x128xf32, #tpu.memory_space<vmem>>, vector<1x128xf32>,
    return
  }
  func.func @transform_0(%arg0: i32) -> i32 {
    %c0_i32 = arith.constant 0 : i32
    %c0_i32_0 = arith.constant 0 : i32
    return %c0_i32 : i32
  }
  func.func @transform_1(%arg0: i32) -> (i32, i32) {
    %c0_i32 = arith.constant 0 : i32
    %c0_i32_0 = arith.constant 0 : i32
    return %c0_i32, %arg0 : i32, i32
  }
  func.func @transform_2(%arg0: i32) -> (i32, i32) {
    %c0_i32 = arith.constant 0 : i32
    %c0_i32_0 = arith.constant 0 : i32
    return %c0_i32, %arg0 : i32, i32
  }
}

</mosaic_0001>

<bundles_post_ra>
// kernel: my_model_forward.1
= control target key start
LH: loop header
LB: loop body
LE: loop exit
PB: predicated region body
PF: predicated region fallthrough
CT: control target
= control target key end

     0   :  { %7 = vsyncpa [#allocation3], 0  ;;  %s191_s12 = smov [#allocation2]   ;;  %s279_s0 = inlined_call_operand.vmem [shape: f32[26], index: 0, kind: input, shape index: {}]   ;;  %s280_s1 = inlined_call_operand.vmem [shape: f32[3,128], index: 1, kind: input, shape index: {}]   ;;  %s281_s2 = inlined_call_operand.vmem [shape: f32[1,128], index: 2, kind: output, shape index: {}]  }
   0x1   :  { %s13_s11 = sshll.u32 %s279_s0, 4  ;;  %s14_s11 = int_to_ptr.vmem [resolvable:$true] %s13_s11 }
   0x2   :  { %16 = dma.vmem_to_smem %s14_s11, 16, %s191_s12, [#allocation3]  }
   0x3   :  { %189 = dma.done.wait [#allocation3], 16  }
   0x4   :  { %190 = vsyncadd [#allocation3], 4294967280 }
   0x5   :  { %23 = sfence }
   0x6   :  { %s27_s13 = sld [smem:[#allocation2]]  ;;  %v24_v0 = vld [vmem:[%s280_s1] sm:$0x1]  ;;  %v25_v1 = vld [vmem:[%s280_s1 + $0x1] sm:$0x1] }
   0x7   :  { %s146_s14 = sld [smem:[#allocation2 + $0x1]]  ;;  %v26_v2 = vld [vmem:[%s280_s1 + $0x2] sm:$0x1] }
   0x8   :  { %s147_s15 = sld [smem:[#allocation2 + $0x2]] }
   0x9   :  { %s148_s16 = sld [smem:[#allocation2 + $0x3]] }
   0xa   :  { %s219_s22 = sld [smem:[#allocation2 + $0x4]] }
   0xb   :  { %s221_s23 = sld [smem:[#allocation2 + $0x7]] }
   0xc   :  { %v28_v3 = vstv %s27_s13  ;;  %s223_s1 = sld [smem:[#allocation2 + $0x5]] }
   0xd   :  { %v29_v4 = vmul.f32 %v28_v3, %v24_v0  ;;  %v31_v5 = vstv %s146_s14  ;;  %s225_s24 = sld [smem:[#allocation2 + $0x8]] }
   0xe   :  { %v32_v6 = vmul.f32 %v31_v5, %v25_v1  ;;  %v35_v7 = vstv %s147_s15  ;;  %s227_s25 = sld [smem:[#allocation2 + $0x6]] }
   0xf   :  { %v36_v8 = vmul.f32 %v35_v7, %v26_v2  ;;  %v39_v10 = vstv %s148_s16  ;;  %s229_s26 = sld [smem:[#allocation2 + $0x9]] }
  0x10   :  { %v33_v9 = vadd.f32 %v32_v6, %v29_v4  ;;  %s231_s27 = sld [smem:[#allocation2 + $0x13]]  ;;  %v61_v24 = vstv %s219_s22 }
  0x11   :  { %s233_s28 = sld [smem:[#allocation2 + $0xa]]  ;;  %v64_v29 = vstv %s221_s23 }
  0x12   :  { %v37_v11 = vadd.f32 %v36_v8, %v33_v9  ;;  %s235_s29 = sld [smem:[#allocation2 + $0xb]]  ;;  %v68_v25 = vstv %s223_s1 }
  0x13   :  { %s237_s30 = sld [smem:[#allocation2 + $0xc]]  ;;  %v71_v30 = vstv %s225_s24 }
  0x14   :  { %v40_v12 = vadd.f32 %v39_v10, %v37_v11  ;;  %s239_s3 = sld [smem:[#allocation2 + $0x14]]  ;;  %v75_v26 = vstv %s227_s25 }
  0x15   :  { %s241_s4 = sld [smem:[#allocation2 + $0xd]]  ;;  %v78_v31 = vstv %s229_s26 }
  0x16   :  { %v149_v13 = vmul.f32 -1.442695, %v40_v12  ;;  %s243_s5 = sld [smem:[#allocation2 + $0xe]]  ;;  %v85_v39 = vstv %s231_s27 }
  0x17   :  { %s245_s6 = sld [smem:[#allocation2 + $0xf]]  ;;  %v83_v35 = vstv %s233_s28 }
  0x18   :  { %173 = vpow2.f32 %v149_v13  ;;  %s247_s7 = sld [smem:[#allocation2 + $0x10]]  ;;  %v88_v40 = vstv %s235_s29 }
  0x19   :  { %s249_s8 = sld [smem:[#allocation2 + $0x11]]  ;;  %v92_v48 = vstv %s237_s30 }
  0x1a   :  { %s254_s9 = sld [smem:[#allocation2 + $0x15]]  ;;  %v100_v49 = vstv %s239_s3 }
  0x1b   :  { %s256_s10 = sld [smem:[#allocation2 + $0x12]]  ;;  %v98_v41 = vstv %s241_s4 }
  0x1c   :  { %v103_v42 = vstv %s243_s5  ;;  %s268_s11 = sld [smem:[#allocation2 + $0x16]] }
  0x1d   :  { %v107_v50 = vstv %s245_s6  ;;  %s170_s12 = sld [smem:[#allocation2 + $0x17]] }
  0x1e   :  { %v174_v14 = vpop.eup %173  ;;  %v113_v43 = vstv %s247_s7  ;;  %s168_s13 = sld [smem:[#allocation2 + $0x19]] }
  0x1f   :  { %v44_v15 = vadd.f32 1.0, %v174_v14  ;;  %v118_v47 = vstv %s249_s8  ;;  %s171_s14 = sld [smem:[#allocation2 + $0x18]] }
  0x20   :  { %v115_v51 = vstv %s254_s9 }
  0x21   :  { %175 = vrcp.f32 %v44_v15  ;;  %v56_v18 = vand.u32 2147483648, %v44_v15  ;;  %vm50_vm0 = vweird.f32 %v44_v15  ;;  %v54_v20 = vand.u32 2147483647, %v44_v15 }
  0x22   :  { %v122_v55 = vstv %s256_s10  ;;  %v128_v7 = vstv %s268_s11 }
  0x23   :  { %v57_v22 = vor.u32 1.1754944e-38, %v56_v18  ;;  %vm55_vm3 = vcmp.eq.f32.partialorder %v54_v20, 8.507059e+37  ;;  %v133_v8 = vstv %s170_s12 }
  0x24   :  { %v130_v12 = vstv %s168_s13 }
  0x25   :  { %v137_v13 = vstv %s171_s14 }
  0x27   :  { %v176_v16 = vpop.eup %175 }
  0x28   :  { %v46_v17 = vmul.f32 %v176_v16, %v44_v15  ;;  %vm51_vm1 = vweird.f32 %v176_v16 }
  0x29   :  { %vm52_vm2 = vmor %vm50_vm0, %vm51_vm1 }
  0x2a   :  { %v47_v19 = vsub.f32 1.0, %v46_v17 }
  0x2c   :  { %v48_v21 = vmul.f32 %v176_v16, %v47_v19 }
  0x2e   :  { %v49_v23 = vadd.f32 %v176_v16, %v48_v21 }
  0x30   :  { %v53_v27 = vsel %vm52_vm2, %v176_v16, %v49_v23 }
  0x31   :  { %v58_v28 = vsel %vm55_vm3, %v57_v22, %v53_v27 }
  0x32   :  { %v62_v32 = vmul.f32 %v61_v24, %v58_v28  ;;  %v69_v33 = vmul.f32 %v68_v25, %v58_v28  ;;  %v76_v34 = vmul.f32 %v75_v26, %v58_v28 }
  0x34   :  { %v65_v36 = vadd.f32 %v64_v29, %v62_v32  ;;  %v72_v37 = vadd.f32 %v71_v30, %v69_v33  ;;  %v79_v38 = vadd.f32 %v78_v31, %v76_v34 }
  0x36   :  { %v66_v44 = vmax.f32 %v65_v36, 0.0  ;;  %v73_v45 = vmax.f32 %v72_v37, 0.0  ;;  %v80_v46 = vmax.f32 %v79_v38, 0.0 }
  0x38   :  { %v84_v52 = vmul.f32 %v83_v35, %v66_v44  ;;  %v89_v53 = vmul.f32 %v88_v40, %v73_v45  ;;  %v99_v54 = vmul.f32 %v98_v41, %v66_v44  ;;  %v104_v56 = vmul.f32 %v103_v42, %v73_v45 }
  0x39   :  { %v114_v57 = vmul.f32 %v113_v43, %v66_v44  ;;  %v119_v58 = vmul.f32 %v118_v47, %v73_v45  ;;  %v93_v60 = vmul.f32 %v92_v48, %v80_v46  ;;  %v108_v62 = vmul.f32 %v107_v50, %v80_v46 }
  0x3a   :  { %v86_v59 = vadd.f32 %v85_v39, %v84_v52  ;;  %v101_v61 = vadd.f32 %v100_v49, %v99_v54  ;;  %v123_v0 = vmul.f32 %v122_v55, %v80_v46 }
  0x3b   :  { %v116_v63 = vadd.f32 %v115_v51, %v114_v57 }
  0x3c   :  { %v90_v1 = vadd.f32 %v89_v53, %v86_v59  ;;  %v105_v2 = vadd.f32 %v104_v56, %v101_v61 }
  0x3d   :  { %v120_v3 = vadd.f32 %v119_v58, %v116_v63 }
  0x3e   :  { %v94_v4 = vadd.f32 %v93_v60, %v90_v1  ;;  %v109_v5 = vadd.f32 %v108_v62, %v105_v2 }
  0x3f   :  { %v124_v6 = vadd.f32 %v123_v0, %v120_v3 }
  0x40   :  { %v95_v9 = vmax.f32 %v94_v4, 0.0  ;;  %v110_v10 = vmax.f32 %v109_v5, 0.0 }
  0x41   :  { %v125_v11 = vmax.f32 %v124_v6, 0.0 }
  0x42   :  { %v129_v14 = vmul.f32 %v128_v7, %v95_v9  ;;  %v134_v15 = vmul.f32 %v133_v8, %v110_v10 }
  0x43   :  { %v138_v17 = vmul.f32 %v137_v13, %v125_v11 }
  0x44   :  { %v131_v16 = vadd.f32 %v130_v12, %v129_v14 }
  0x46   :  { %v135_v18 = vadd.f32 %v134_v15, %v131_v16 }
  0x48   :  { %v139_v19 = vadd.f32 %v138_v17, %v135_v18 }
  0x4a   :  { %140 = vst [vmem:[%s281_s2] sm:$0x1] %v139_v19 }
  0x4b   :  { %145 = vsyncpa [#allocation3], 1 }

</bundles_post_ra>
